<compile_context>
chip_gen: v6e
topology: v6e:2x2x1
jax: 0.10.0
libtpu: 0.0.40
codegen_flags: <defaults>
</compile_context>

<pallas_src>
import jax
import jax.numpy as jnp
from jax.experimental import pallas as pl
from jax.experimental.pallas import tpu as pltpu


_LANES = 1024      # lane-dense width (multiple of 128; 8 vregs wide for f32)
_TILE_ROWS = 256   # 256 x 1024 x 4 B = 1 MiB f32 tile; multiple of 32 sublanes
                   # so bf16/int8 packed tiles also stay on native boundaries.


def _temperature_kernel(temp_ref, x_ref, o_ref):
    # temp_ref: (1,) float32 in SMEM.  x_ref / o_ref: (tile_rows, _LANES) VMEM tiles.
    t = temp_ref[0]
    x = x_ref[...].astype(jnp.float32)
    o_ref[...] = (x / t).astype(o_ref.dtype)


def temperature_forward(data: jax.Array, temperature) -> jax.Array:
    """Pallas TPU equivalent of `Temperature(temperature).forward(data)`."""
    orig_shape = data.shape
    in_dtype = data.dtype
    # PyTorch: float tensor / python float keeps dtype; integer tensor promotes.
    out_dtype = in_dtype if jnp.issubdtype(in_dtype, jnp.floating) else jnp.float32

    total = int(data.size)
    flat = data.reshape(-1)

    rows = pl.cdiv(total, _LANES)
    padded = rows * _LANES
    if padded != total:
        flat = jnp.pad(flat, (0, padded - total))
    x2d = flat.reshape(rows, _LANES)

    # Tile rows: fixed 1 MiB tiles for large inputs, full extent for small ones
    # (block dim equal to the full array dim is always legal).
    tile_rows = _TILE_ROWS if rows >= _TILE_ROWS else rows
    grid = (pl.cdiv(rows, tile_rows),)

    temp_arr = jnp.asarray([temperature], dtype=jnp.float32)

    # Alias the (reshaped/padded) input buffer onto the output when dtypes match.
    io_aliases = {1: 0} if out_dtype == in_dtype else {}

    out2d = pl.pallas_call(
        _temperature_kernel,
        out_shape=jax.ShapeDtypeStruct((rows, _LANES), out_dtype),
        grid=grid,
        in_specs=[
            pl.BlockSpec(memory_space=pltpu.MemorySpace.SMEM),    # temperature scalar
            pl.BlockSpec((tile_rows, _LANES), lambda i: (i, 0)),  # data tiles
        ],
        out_specs=pl.BlockSpec((tile_rows, _LANES), lambda i: (i, 0)),
        input_output_aliases=io_aliases,
        compiler_params=pltpu.CompilerParams(
            dimension_semantics=("parallel",),
        ),
    )(temp_arr, x2d)

    out_flat = out2d.reshape(-1)
    if padded != total:
        out_flat = out_flat[:total]
    return out_flat.reshape(orig_shape)


if __name__ == "__main__":
    key = jax.random.PRNGKey(0)
    # Small NCHW-style input consistent with typical usage of the wrapper.
    x = jax.random.normal(key, (2, 4, 16, 16), dtype=jnp.float32)
    temperature = 2.5  # deterministic "parameter" from __init__

    out = jax.block_until_ready(temperature_forward(x, temperature))

    # Correctness check against the plain-JAX reference.
    ref = x / temperature
    assert out.shape == x.shape and out.dtype == x.dtype
    assert jnp.allclose(out, ref, rtol=1e-6, atol=1e-6)

    print("KERNEL_OK")
</pallas_src>

<mosaic_0001>
module attributes {stable_mosaic.version = 11 : i64} {
  func.func @_temperature_kernel(%arg0: i32, %arg1: memref<1xf32, #tpu.memory_space<smem>>, %arg2: memref<2x1024xf32, #tpu.memory_space<vmem>>, %arg3: memref<2x1024xf32, #tpu.memory_space<vmem>>) attributes {dimension_semantics = [#tpu.dimension_semantics<parallel>], iteration_bounds = array<i64: 1>, scalar_prefetch = 0 : i64, scratch_operands = 0 : i64, tpu.core_type = #tpu.core_type<tc>, window_params = [{transform_indices = @transform_0, window_bounds = array<i64: 1>}, {transform_indices = @transform_1, window_bounds = array<i64: 2, 1024>}, {transform_indices = @transform_2, window_bounds = array<i64: 2, 1024>}]} {
    %c0 = arith.constant 0 : index
    %0 = memref.load %arg1[%c0] : memref<1xf32, #tpu.memory_space<smem>>
    %c0_0 = arith.constant 0 : index
    %c0_1 = arith.constant 0 : index
    %1 = vector.load %arg2[%c0_0, %c0_1] : memref<2x1024xf32, #tpu.memory_space<vmem>>, vector<2x1024xf32>
    %2 = vector.broadcast %0 : f32 to vector<2x1024xf32>
    %3 = arith.divf %1, %2 : vector<2x1024xf32>
    %c0_2 = arith.constant 0 : index
    %c0_3 = arith.constant 0 : index
    %4 = vector.load %arg3[%c0_2, %c0_3] : memref<2x1024xf32, #tpu.memory_space<vmem>>, vector<2x1024xf32>
    tpu.vector_store %arg3[%c0_2, %c0_3], %3 {strides = array<i32>} : memref<2x1024xf32, #tpu.memory_space<vmem>>, vector<2x1024xf32>,
    return
  }
  func.func @transform_0(%arg0: i32) -> i32 {
    %c0_i32 = arith.constant 0 : i32
    %c0_i32_0 = arith.constant 0 : i32
    return %c0_i32 : i32
  }
  func.func @transform_1(%arg0: i32) -> (i32, i32) {
    %c0_i32 = arith.constant 0 : i32
    %c0_i32_0 = arith.constant 0 : i32
    return %arg0, %c0_i32 : i32, i32
  }
  func.func @transform_2(%arg0: i32) -> (i32, i32) {
    %c0_i32 = arith.constant 0 : i32
    %c0_i32_0 = arith.constant 0 : i32
    return %arg0, %c0_i32 : i32, i32
  }
}

</mosaic_0001>

<bundles_post_ra>
// kernel: tpu_custom_call.1
= control target key start
LH: loop header
LB: loop body
LE: loop exit
PB: predicated region body
PF: predicated region fallthrough
CT: control target
= control target key end

     0   :  { %8 = vsyncpa [#allocation4], 0  ;;  %s123_s0 = inlined_call_operand.<no memory space> [shape: f32[1], index: 0, kind: input, shape index: {}]   ;;  %s124_s1 = inlined_call_operand.hbm [shape: f32[2,1024], index: 1, kind: input, shape index: {}, may-alias: {1,2}]   ;;  %s125_s2 = inlined_call_operand.hbm [shape: f32[2,1024], index: 2, kind: output, shape index: {}, may-alias: {1,2}]  }
   0x1   :  { %9 = vsyncpa [#allocation5], 0  ;;  %s97_s9 = smov [#allocation3]  }
   0x2   :  { %s18_s10 = sshll.u32 %s97_s9, 4  ;;  %s19_s10 = int_to_ptr.vmem [resolvable:$true] %s18_s10 }
   0x3   :  { %s61_s11 = scalar_lea.vmem %s19_s10, 256  ;;  %p66_p1 = scmp.lt.s32.totalorder %s19_s10, %s19_s10 }
   0x4   :  { %p62_p0 = scmp.ne.s32.totalorder %s19_s10, %s61_s11  ;;  %p67_p2 = scmp.lt.s32.totalorder %s61_s11, %s61_s11 }
   0x6   :  { %p68_p3 = por %p67_p2, %p66_p1 }
   0x8   :  { %p69_p4 = pnand %p68_p3, %p62_p0 }
   0xa   :  { %72 = shalt.err (!%p69_p4)
}
   0xb   :  { %21 = dma.hbm_to_vmem [thread:$0]  %s124_s1, 256, %s19_s10, [#allocation4]  }
   0xc   :  { %93 = dma.done.wait [#allocation4], 256  }
   0xd   :  { %94 = vsyncadd [#allocation4], 4294967040  ;;  %v28_v0 = vstv %s123_s0  ;;  %v26_v1 = vld [vmem:[#allocation3] sm:$0xff]  ;;  %v27_v2 = vld [vmem:[#allocation3 + $0x8] sm:$0xff]  ;;  %s98_s16 = smov [#allocation6]  }
   0xe   :  { %51 = vrcp.f32 %v28_v0  ;;  %s40_s17 = sshll.u32 %s98_s16, 4  ;;  %s41_s17 = int_to_ptr.vmem [resolvable:$true] %s40_s17 }
   0xf   :  { %s73_s18 = scalar_lea.vmem %s41_s17, 256  ;;  %p78_p6 = scmp.lt.s32.totalorder %s41_s17, %s41_s17 }
  0x10   :  { %p74_p5 = scmp.ne.s32.totalorder %s41_s17, %s73_s18  ;;  %p79_p7 = scmp.lt.s32.totalorder %s73_s18, %s73_s18 }
  0x12   :  { %p80_p8 = por %p79_p7, %p78_p6 }
  0x14   :  { %p81_p9 = pnand %p80_p8, %p74_p5 }
  0x1b   :  { %v52_v3 = vpop.eup %51 }
  0x1c   :  { %v30_v4 = vmul.f32 %v52_v3, %v26_v1  ;;  %v31_v5 = vmul.f32 %v52_v3, %v27_v2 }
  0x1e   :  { %32 = vst [vmem:[#allocation6] sm:$0xff] %v30_v4  ;;  %33 = vst [vmem:[#allocation6 + $0x8] sm:$0xff] %v31_v5 }
  0x1f   :  { %84 = shalt.err (!%p81_p9)
}
  0x20   :  { %43 = dma.vmem_to_hbm [thread:$0]  %s41_s17, 256, %s125_s2, [#allocation5]  }
  0x21   :  { %95 = dma.done.wait [#allocation5], 256  }
  0x22   :  { %96 = vsyncadd [#allocation5], 4294967040 }
  0x23   :  { %47 = vsyncpa [#allocation4], 1 }
  0x24   :  { %48 = vsyncpa [#allocation5], 1 }

</bundles_post_ra>
